<compile_context>
chip_gen: v6e
topology: v6e:2x2x1
jax: 0.10.0
libtpu: 0.0.40
codegen_flags: <defaults>
</compile_context>

<pallas_src>
import functools

import jax
import jax.numpy as jnp
from jax.experimental import pallas as pl
from jax.experimental.pallas import tpu as pltpu


def _round_up(x, m):
    return ((x + m - 1) // m) * m


# ---------------------------------------------------------------------------
# Fused Pallas kernel: grid = (num_layers,), h resident in VMEM scratch
# ---------------------------------------------------------------------------

def _gin0_fused_kernel(a_ref, x0_ref, p_ref,
                       w1_ref, w2_ref, vec_ref,
                       l1w_ref, l1b_ref, l2w_ref, l2b_ref,
                       o_ref, h_ref, *, num_classes):
    l = pl.program_id(0)
    num_layers = pl.num_programs(0)

    @pl.when(l == 0)
    def _init():
        h_ref[...] = x0_ref[...]
        o_ref[...] = jnp.zeros_like(o_ref)

    # ---- one GIN layer ------------------------------------------------------
    x = h_ref[...]                                            # f32 (N_pad, Hp)
    # (1+eps)*x_i + sum_j x_j with eps=0  ==  (A + I) @ x ; identity folded in.
    agg = jnp.dot(a_ref[...], x.astype(jnp.bfloat16),
                  preferred_element_type=jnp.float32)
    v = vec_ref[0]                                            # (4, Hp) f32
    # Linear1 -> ReLU   (BN1 is folded into W2'/b2' at construction time)
    h = jnp.dot(agg.astype(jnp.bfloat16), w1_ref[0],
                preferred_element_type=jnp.float32) + v[0:1]
    h = jnp.maximum(h, 0.0).astype(jnp.bfloat16)
    # Linear2(+BN1 fold) -> ReLU -> BN2 (eval affine)
    h = jnp.dot(h, w2_ref[0], preferred_element_type=jnp.float32) + v[1:2]
    h = jnp.maximum(h, 0.0)
    h = h * v[2:3] + v[3:4]
    h_ref[...] = h

    # ---- head on the last layer step (h never leaves VMEM) -------------------
    @pl.when(l == num_layers - 1)
    def _head():
        pooled = jnp.dot(p_ref[...], h, preferred_element_type=jnp.float32)
        z = jnp.dot(pooled, l1w_ref[...],
                    preferred_element_type=jnp.float32) + l1b_ref[...]
        z = jnp.maximum(z, 0.0)            # dropout(eval) == identity
        logits = jnp.dot(z, l2w_ref[...],
                         preferred_element_type=jnp.float32) + l2b_ref[...]
        # mask padded class lanes out of the softmax
        lane = jax.lax.broadcasted_iota(jnp.int32, logits.shape, 1)
        logits = jnp.where(lane < num_classes, logits, -1e30)
        m = jnp.max(logits, axis=-1, keepdims=True)
        lse = jnp.log(jnp.sum(jnp.exp(logits - m), axis=-1, keepdims=True)) + m
        o_ref[...] = logits - lse


def _gin0_pallas(params, A_hat, x0, P, num_classes):
    N_pad, Hp = x0.shape
    B_pad = P.shape[0]
    Cp = params["lin2_w"].shape[-1]
    L = params["w1"].shape[0]

    kernel = functools.partial(_gin0_fused_kernel, num_classes=num_classes)

    const2 = lambda l: (0, 0)          # resident blocks: DMA'd once, no re-fetch
    layer3 = lambda l: (l, 0, 0)       # per-layer stacked weights, pipelined

    in_specs = [
        pl.BlockSpec((N_pad, N_pad), const2),      # A_hat (bf16)
        pl.BlockSpec((N_pad, Hp), const2),         # x0
        pl.BlockSpec((B_pad, N_pad), const2),      # P (mean-pool matrix)
        pl.BlockSpec((1, Hp, Hp), layer3),         # W1 stacked (bf16)
        pl.BlockSpec((1, Hp, Hp), layer3),         # W2' stacked (BN1 folded, bf16)
        pl.BlockSpec((1, 4, Hp), layer3),          # [b1, b2', s2, t2] packed (f32)
        pl.BlockSpec((Hp, Hp), const2),            # lin1_w
        pl.BlockSpec((1, Hp), const2),             # lin1_b
        pl.BlockSpec((Hp, Cp), const2),            # lin2_w
        pl.BlockSpec((1, Cp), const2),             # lin2_b
    ]
    out_spec = pl.BlockSpec((B_pad, Cp), const2)

    # VMEM budget (resident blocks + double-buffered per-layer weights) + headroom.
    per_layer_bytes = 2 * Hp * Hp * 2 + 8 * Hp * 4
    resident_bytes = (N_pad * N_pad * 2 + N_pad * Hp * 4 + B_pad * N_pad * 4
                      + N_pad * Hp * 4                      # h scratch
                      + Hp * Hp * 4 + Hp * 4 + Hp * Cp * 4 + Cp * 4
                      + B_pad * Cp * 4)
    vmem_limit = int(min(max(2 * (resident_bytes + 2 * per_layer_bytes),
                             32 * 1024 * 1024),
                         100 * 1024 * 1024))

    flops = (L * (2 * N_pad * N_pad * Hp + 4 * N_pad * Hp * Hp)
             + 2 * B_pad * N_pad * Hp + 4 * B_pad * Hp * Hp)
    bytes_accessed = (N_pad * N_pad * 2 + N_pad * Hp * 4 + B_pad * N_pad * 4
                      + L * per_layer_bytes
                      + Hp * Hp * 4 + Hp * Cp * 4 + B_pad * Cp * 4)

    return pl.pallas_call(
        kernel,
        out_shape=jax.ShapeDtypeStruct((B_pad, Cp), jnp.float32),
        grid_spec=pltpu.PrefetchScalarGridSpec(
            num_scalar_prefetch=0,
            grid=(L,),
            in_specs=in_specs,
            out_specs=out_spec,
            scratch_shapes=[pltpu.VMEM((N_pad, Hp), jnp.float32)]),
        compiler_params=pltpu.CompilerParams(
            # layer axis is a true sequential dependency -> "arbitrary"
            dimension_semantics=("arbitrary",),
            vmem_limit_bytes=vmem_limit),
        cost_estimate=pl.CostEstimate(
            flops=int(flops),
            transcendentals=int(B_pad * Cp),
            bytes_accessed=int(bytes_accessed)),
    )(A_hat, x0, P,
      params["w1"], params["w2"], params["vecs"],
      params["lin1_w"], params["lin1_b"], params["lin2_w"], params["lin2_b"])


# ---------------------------------------------------------------------------
# Dense input construction (adjacency + I, padded features, mean-pool matrix)
# ---------------------------------------------------------------------------

def _build_dense_inputs(params, x, edge_index, batch, num_graphs):
    N = x.shape[0]
    Hp = params["w1"].shape[-1]
    N_pad = max(128, _round_up(N, 128))
    B_pad = max(8, _round_up(num_graphs, 8))

    # A_hat[target, source] = edge count + identity (GIN self-term, eps = 0).
    # Small integer counts are exact in bf16.
    A = jnp.zeros((N_pad, N_pad), jnp.float32)
    A = A.at[edge_index[1], edge_index[0]].add(1.0)
    A_hat = (A + jnp.eye(N_pad, dtype=jnp.float32)).astype(jnp.bfloat16)

    # node features zero-padded to Hp lanes (zero columns stay zero through the MLP)
    x0 = jnp.zeros((N_pad, Hp), jnp.float32).at[:N, :x.shape[1]].set(
        x.astype(jnp.float32))

    # mean-pool matrix; padded nodes get batch id -1 -> contribute to no graph
    batch_full = jnp.full((N_pad,), -1, jnp.int32).at[:N].set(batch.astype(jnp.int32))
    onehot = (batch_full[None, :] ==
              jnp.arange(B_pad, dtype=jnp.int32)[:, None]).astype(jnp.float32)
    counts = jnp.maximum(onehot.sum(axis=1, keepdims=True), 1.0)
    P = onehot / counts
    return A_hat, x0, P


@functools.partial(jax.jit, static_argnames=("num_graphs", "num_classes"))
def gin0_forward(params, x, edge_index, batch, num_graphs, num_classes):
    A_hat, x0, P = _build_dense_inputs(params, x, edge_index, batch, num_graphs)
    out = _gin0_pallas(params, A_hat, x0, P, num_classes)
    return out[:num_graphs, :num_classes]


# Pure-JAX reference with the same bf16 casts (correctness check for the kernel).
@functools.partial(jax.jit, static_argnames=("num_graphs", "num_classes"))
def gin0_reference(params, x, edge_index, batch, num_graphs, num_classes):
    A_hat, x0, P = _build_dense_inputs(params, x, edge_index, batch, num_graphs)
    L = params["w1"].shape[0]
    h = x0
    for l in range(L):
        v = params["vecs"][l]                               # (4, Hp)
        agg = jnp.dot(A_hat, h.astype(jnp.bfloat16),
                      preferred_element_type=jnp.float32)
        z = jnp.dot(agg.astype(jnp.bfloat16), params["w1"][l],
                    preferred_element_type=jnp.float32) + v[0]
        z = jnp.maximum(z, 0.0).astype(jnp.bfloat16)
        z = jnp.dot(z, params["w2"][l],
                    preferred_element_type=jnp.float32) + v[1]
        z = jnp.maximum(z, 0.0)
        h = z * v[2] + v[3]
    pooled = P @ h
    z = jnp.maximum(pooled @ params["lin1_w"] + params["lin1_b"], 0.0)
    logits = z @ params["lin2_w"] + params["lin2_b"]
    logits = logits[:num_graphs, :num_classes]
    return jax.nn.log_softmax(logits, axis=-1)


# ---------------------------------------------------------------------------
# Parameter construction (deterministic, synthetic; BN folded & padded/stacked)
# ---------------------------------------------------------------------------

def _linear(key, d_in, d_out):
    kw, kb = jax.random.split(key)
    bound = 1.0 / (float(d_in) ** 0.5)
    w = jax.random.uniform(kw, (d_in, d_out), jnp.float32, -bound, bound)
    b = jax.random.uniform(kb, (d_out,), jnp.float32, -bound, bound)
    return w, b


def _gin_mlp_padded(key, d_in, hidden, hp, bn_eps=1e-5):
    k1, k2 = jax.random.split(key)
    w1, b1 = _linear(k1, d_in, hidden)
    w2, b2 = _linear(k2, hidden, hidden)
    # fresh eval-mode BatchNorm1d: gamma=1, beta=0, running_mean=0, running_var=1
    s1 = jnp.full((hidden,), 1.0 / ((1.0 + bn_eps) ** 0.5), jnp.float32)
    t1 = jnp.zeros((hidden,), jnp.float32)
    s2 = jnp.full((hidden,), 1.0 / ((1.0 + bn_eps) ** 0.5), jnp.float32)
    t2 = jnp.zeros((hidden,), jnp.float32)
    # Fold BN1 (affine after ReLU) into Linear2:
    #   (r*s1 + t1) @ W2 + b2 == r @ (s1[:,None]*W2) + (t1 @ W2 + b2)
    w2f = s1[:, None] * w2
    b2f = b2 + t1 @ w2
    # zero-preserving padding: zero rows/cols for W, zero bias/shift, unit scale
    w1p = jnp.zeros((hp, hp), jnp.float32).at[:d_in, :hidden].set(w1)
    b1p = jnp.zeros((hp,), jnp.float32).at[:hidden].set(b1)
    w2p = jnp.zeros((hp, hp), jnp.float32).at[:hidden, :hidden].set(w2f)
    b2p = jnp.zeros((hp,), jnp.float32).at[:hidden].set(b2f)
    s2p = jnp.ones((hp,), jnp.float32).at[:hidden].set(s2)
    t2p = jnp.zeros((hp,), jnp.float32).at[:hidden].set(t2)
    vec = jnp.stack([b1p, b2p, s2p, t2p], axis=0)            # (4, hp)
    return w1p, w2p, vec


def make_gin0_params(key, hidden=64, num_layers=8, num_classes=3):
    hp = max(128, _round_up(hidden, 128))
    cp = max(128, _round_up(num_classes, 128))
    keys = jax.random.split(key, num_layers + 2)

    w1s, w2s, vecs = [], [], []
    d_in = 1
    for i in range(num_layers):
        w1p, w2p, vec = _gin_mlp_padded(keys[i], d_in, hidden, hp)
        w1s.append(w1p); w2s.append(w2p); vecs.append(vec)
        d_in = hidden

    lin1_w, lin1_b = _linear(keys[num_layers], hidden, hidden)
    lin2_w, lin2_b = _linear(keys[num_layers + 1], hidden, num_classes)

    return {
        "w1": jnp.stack(w1s).astype(jnp.bfloat16),   # (L, Hp, Hp)
        "w2": jnp.stack(w2s).astype(jnp.bfloat16),   # (L, Hp, Hp), BN1 folded
        "vecs": jnp.stack(vecs),                     # (L, 4, Hp) f32: b1,b2',s2,t2
        "lin1_w": jnp.zeros((hp, hp), jnp.float32).at[:hidden, :hidden].set(lin1_w),
        "lin1_b": jnp.zeros((1, hp), jnp.float32).at[0, :hidden].set(lin1_b),
        "lin2_w": jnp.zeros((hp, cp), jnp.float32).at[:hidden, :num_classes].set(lin2_w),
        "lin2_b": jnp.zeros((1, cp), jnp.float32).at[0, :num_classes].set(lin2_b),
    }


# ---------------------------------------------------------------------------
# Demo
# ---------------------------------------------------------------------------

if __name__ == "__main__":
    HIDDEN = 32
    NUM_LAYERS = 4
    NUM_CLASSES = 3
    N_NODES = 16
    N_EDGES = 40
    N_GRAPHS = 2

    key = jax.random.PRNGKey(0)
    k_par, k_x, k_src, k_dst = jax.random.split(key, 4)

    params = make_gin0_params(k_par, hidden=HIDDEN, num_layers=NUM_LAYERS,
                              num_classes=NUM_CLASSES)

    # node features: [N, 1]  (Linear(1, hidden) in conv1's MLP)
    x = jax.random.normal(k_x, (N_NODES, 1), jnp.float32)

    # random directed edges, kept within each graph's node range
    src0 = jax.random.randint(k_src, (N_EDGES // 2,), 0, N_NODES // 2)
    dst0 = jax.random.randint(k_dst, (N_EDGES // 2,), 0, N_NODES // 2)
    src1 = jax.random.randint(k_src, (N_EDGES // 2,), N_NODES // 2, N_NODES)
    dst1 = jax.random.randint(k_dst, (N_EDGES // 2,), N_NODES // 2, N_NODES)
    edge_index = jnp.stack([jnp.concatenate([src0, src1]),
                            jnp.concatenate([dst0, dst1])], axis=0).astype(jnp.int32)

    # batch vector: first half of nodes -> graph 0, second half -> graph 1
    batch = jnp.concatenate([jnp.zeros((N_NODES // 2,), jnp.int32),
                             jnp.ones((N_NODES // 2,), jnp.int32)])

    out = gin0_forward(params, x, edge_index, batch,
                       num_graphs=N_GRAPHS, num_classes=NUM_CLASSES)
    out = jax.block_until_ready(out)

    ref = gin0_reference(params, x, edge_index, batch,
                         num_graphs=N_GRAPHS, num_classes=NUM_CLASSES)
    ref = jax.block_until_ready(ref)

    assert out.shape == (N_GRAPHS, NUM_CLASSES)
    assert bool(jnp.all(jnp.isfinite(out)))
    # log_softmax rows should sum (in prob space) to ~1
    assert jnp.allclose(jnp.exp(out).sum(axis=-1), 1.0, atol=1e-4)
    # match the pure-JAX reference (same bf16 casts)
    assert jnp.allclose(out, ref, atol=2e-2, rtol=2e-2)
    print("KERNEL_OK")
</pallas_src>

<mosaic_0001>
module attributes {stable_mosaic.version = 11 : i64} {
  func.func private @main(%arg0: i32) attributes {dimension_semantics = [#tpu.dimension_semantics<core_parallel>], iteration_bounds = array<i64: 2>, tpu.core_type = #tpu.core_type<sc_scalar_subcore>, window_params = []} {
    return
  }
}

module attributes {stable_mosaic.version = 11 : i64} {
  func.func private @main(%arg0: i32) attributes {dimension_semantics = [#tpu.dimension_semantics<core_parallel>], iteration_bounds = array<i64: 2>, tpu.core_type = #tpu.core_type<sc_scalar_subcore>, window_params = []} {
    return
  }
}

module attributes {stable_mosaic.version = 11 : i64} {
  func.func @_gin0_fused_kernel(%arg0: i32, %arg1: memref<128x128xbf16, #tpu.memory_space<vmem>>, %arg2: memref<128x128xf32, #tpu.memory_space<vmem>>, %arg3: memref<8x128xf32, #tpu.memory_space<vmem>>, %arg4: memref<1x128x128xbf16, #tpu.memory_space<vmem>>, %arg5: memref<1x128x128xbf16, #tpu.memory_space<vmem>>, %arg6: memref<1x4x128xf32, #tpu.memory_space<vmem>>, %arg7: memref<128x128xf32, #tpu.memory_space<vmem>>, %arg8: memref<1x128xf32, #tpu.memory_space<vmem>>, %arg9: memref<128x128xf32, #tpu.memory_space<vmem>>, %arg10: memref<1x128xf32, #tpu.memory_space<vmem>>, %arg11: memref<8x128xf32, #tpu.memory_space<vmem>>, %arg12: memref<128x128xf32, #tpu.memory_space<vmem>>) attributes {dimension_semantics = [#tpu.dimension_semantics<arbitrary>], iteration_bounds = array<i64: 4>, scalar_prefetch = 0 : i64, scratch_operands = 1 : i64, tpu.core_type = #tpu.core_type<tc>, window_params = [{pipeline_mode = #tpu.pipeline_mode<synchronous>, transform_indices = @transform_0, window_bounds = array<i64: 128, 128>}, {pipeline_mode = #tpu.pipeline_mode<synchronous>, transform_indices = @transform_1, window_bounds = array<i64: 128, 128>}, {pipeline_mode = #tpu.pipeline_mode<synchronous>, transform_indices = @transform_2, window_bounds = array<i64: 8, 128>}, {transform_indices = @transform_3, window_bounds = array<i64: 1, 128, 128>}, {transform_indices = @transform_4, window_bounds = array<i64: 1, 128, 128>}, {transform_indices = @transform_5, window_bounds = array<i64: 1, 4, 128>}, {pipeline_mode = #tpu.pipeline_mode<synchronous>, transform_indices = @transform_6, window_bounds = array<i64: 128, 128>}, {pipeline_mode = #tpu.pipeline_mode<synchronous>, transform_indices = @transform_7, window_bounds = array<i64: 1, 128>}, {pipeline_mode = #tpu.pipeline_mode<synchronous>, transform_indices = @transform_8, window_bounds = array<i64: 128, 128>}, {pipeline_mode = #tpu.pipeline_mode<synchronous>, transform_indices = @transform_9, window_bounds = array<i64: 1, 128>}, {pipeline_mode = #tpu.pipeline_mode<synchronous>, transform_indices = @transform_10, window_bounds = array<i64: 8, 128>}]} {
    %c0_i32 = arith.constant 0 : i32
    %0 = arith.cmpi eq, %arg0, %c0_i32 : i32
    %1 = arith.extui %0 : i1 to i32
    %c0_i32_0 = arith.constant 0 : i32
    %2 = arith.cmpi ne, %1, %c0_i32_0 : i32
    scf.if %2 {
      %c0_20 = arith.constant 0 : index
      %c0_21 = arith.constant 0 : index
      %37 = vector.load %arg2[%c0_20, %c0_21] : memref<128x128xf32, #tpu.memory_space<vmem>>, vector<128x128xf32>
      %c0_22 = arith.constant 0 : index
      %c0_23 = arith.constant 0 : index
      %38 = vector.load %arg12[%c0_22, %c0_23] : memref<128x128xf32, #tpu.memory_space<vmem>>, vector<128x128xf32>
      tpu.vector_store %arg12[%c0_22, %c0_23], %37 {strides = array<i32>} : memref<128x128xf32, #tpu.memory_space<vmem>>, vector<128x128xf32>,
      %cst_24 = arith.constant 0.000000e+00 : f32
      %39 = vector.broadcast %cst_24 : f32 to vector<8x128xf32>
      %c0_25 = arith.constant 0 : index
      %c0_26 = arith.constant 0 : index
      %40 = vector.load %arg11[%c0_25, %c0_26] : memref<8x128xf32, #tpu.memory_space<vmem>>, vector<8x128xf32>
      tpu.vector_store %arg11[%c0_25, %c0_26], %39 {strides = array<i32>} : memref<8x128xf32, #tpu.memory_space<vmem>>, vector<8x128xf32>,
    } else {
    }
    %c0 = arith.constant 0 : index
    %c0_1 = arith.constant 0 : index
    %3 = vector.load %arg12[%c0, %c0_1] : memref<128x128xf32, #tpu.memory_space<vmem>>, vector<128x128xf32>
    %c0_2 = arith.constant 0 : index
    %c0_3 = arith.constant 0 : index
    %4 = vector.load %arg1[%c0_2, %c0_3] : memref<128x128xbf16, #tpu.memory_space<vmem>>, vector<128x128xbf16>
    %5 = arith.truncf %3 : vector<128x128xf32> to vector<128x128xbf16>
    %cst = arith.constant dense<0.000000e+00> : vector<128x128xf32>
    %6 = tpu.matmul %4, %5, %cst {dimension_numbers = #tpu.dot_dimension_numbers<[1], [0], [0], [1], [0, 0, 1, 1], [], []>} : vector<128x128xbf16>, vector<128x128xbf16>, vector<128x128xf32> -> vector<128x128xf32>
    %c0_4 = arith.constant 0 : index
    %c0_5 = arith.constant 0 : index
    %c0_6 = arith.constant 0 : index
    %7 = vector.load %arg6[%c0_4, %c0_5, %c0_6] : memref<1x4x128xf32, #tpu.memory_space<vmem>>, vector<1x4x128xf32>
    %8 = vector.shape_cast %7 : vector<1x4x128xf32> to vector<4x128xf32>
    %9 = arith.truncf %6 : vector<128x128xf32> to vector<128x128xbf16>
    %c0_7 = arith.constant 0 : index
    %c0_8 = arith.constant 0 : index
    %c0_9 = arith.constant 0 : index
    %10 = vector.load %arg4[%c0_7, %c0_8, %c0_9] : memref<1x128x128xbf16, #tpu.memory_space<vmem>>, vector<1x128x128xbf16>
    %11 = vector.shape_cast %10 : vector<1x128x128xbf16> to vector<128x128xbf16>
    %cst_10 = arith.constant dense<0.000000e+00> : vector<128x128xf32>
    %12 = tpu.matmul %9, %11, %cst_10 {dimension_numbers = #tpu.dot_dimension_numbers<[1], [0], [0], [1], [0, 0, 1, 1], [], []>} : vector<128x128xbf16>, vector<128x128xbf16>, vector<128x128xf32> -> vector<128x128xf32>
    %13 = vector.extract_strided_slice %8 {offsets = [0, 0], sizes = [1, 128], strides = [1, 1]} : vector<4x128xf32> to vector<1x128xf32>
    %14 = vector.broadcast %13 : vector<1x128xf32> to vector<128x128xf32>
    %15 = arith.addf %12, %14 : vector<128x128xf32>
    %cst_11 = arith.constant 0.000000e+00 : f32
    %16 = vector.broadcast %cst_11 : f32 to vector<128x128xf32>
    %17 = arith.maximumf %15, %16 : vector<128x128xf32>
    %18 = arith.truncf %17 : vector<128x128xf32> to vector<128x128xbf16>
    %c0_12 = arith.constant 0 : index
    %c0_13 = arith.constant 0 : index
    %c0_14 = arith.constant 0 : index
    %19 = vector.load %arg5[%c0_12, %c0_13, %c0_14] : memref<1x128x128xbf16, #tpu.memory_space<vmem>>, vector<1x128x128xbf16>
    %20 = vector.shape_cast %19 : vector<1x128x128xbf16> to vector<128x128xbf16>
    %cst_15 = arith.constant dense<0.000000e+00> : vector<128x128xf32>
    %21 = tpu.matmul %18, %20, %cst_15 {dimension_numbers = #tpu.dot_dimension_numbers<[1], [0], [0], [1], [0, 0, 1, 1], [], []>} : vector<128x128xbf16>, vector<128x128xbf16>, vector<128x128xf32> -> vector<128x128xf32>
    %22 = vector.extract_strided_slice %8 {offsets = [1, 0], sizes = [1, 128], strides = [1, 1]} : vector<4x128xf32> to vector<1x128xf32>
    %23 = vector.broadcast %22 : vector<1x128xf32> to vector<128x128xf32>
    %24 = arith.addf %21, %23 : vector<128x128xf32>
    %cst_16 = arith.constant 0.000000e+00 : f32
    %25 = vector.broadcast %cst_16 : f32 to vector<128x128xf32>
    %26 = arith.maximumf %24, %25 : vector<128x128xf32>
    %27 = vector.extract_strided_slice %8 {offsets = [2, 0], sizes = [1, 128], strides = [1, 1]} : vector<4x128xf32> to vector<1x128xf32>
    %28 = vector.broadcast %27 : vector<1x128xf32> to vector<128x128xf32>
    %29 = arith.mulf %26, %28 : vector<128x128xf32>
    %30 = vector.extract_strided_slice %8 {offsets = [3, 0], sizes = [1, 128], strides = [1, 1]} : vector<4x128xf32> to vector<1x128xf32>
    %31 = vector.broadcast %30 : vector<1x128xf32> to vector<128x128xf32>
    %32 = arith.addf %29, %31 : vector<128x128xf32>
    %c0_17 = arith.constant 0 : index
    %c0_18 = arith.constant 0 : index
    %33 = vector.load %arg12[%c0_17, %c0_18] : memref<128x128xf32, #tpu.memory_space<vmem>>, vector<128x128xf32>
    tpu.vector_store %arg12[%c0_17, %c0_18], %32 {strides = array<i32>} : memref<128x128xf32, #tpu.memory_space<vmem>>, vector<128x128xf32>,
    %c3_i32 = arith.constant 3 : i32
    %34 = arith.cmpi eq, %arg0, %c3_i32 : i32
    %35 = arith.extui %34 : i1 to i32
    %c0_i32_19 = arith.constant 0 : i32
    %36 = arith.cmpi ne, %35, %c0_i32_19 : i32
    scf.if %36 {
      %c0_20 = arith.constant 0 : index
      %c0_21 = arith.constant 0 : index
      %37 = vector.load %arg3[%c0_20, %c0_21] : memref<8x128xf32, #tpu.memory_space<vmem>>, vector<8x128xf32>
      %cst_22 = arith.constant dense<0.000000e+00> : vector<8x128xf32>
      %38 = tpu.matmul %37, %32, %cst_22 {dimension_numbers = #tpu.dot_dimension_numbers<[1], [0], [0], [1], [0, 0, 1, 1], [], []>} : vector<8x128xf32>, vector<128x128xf32>, vector<8x128xf32> -> vector<8x128xf32>
      %c0_23 = arith.constant 0 : index
      %c0_24 = arith.constant 0 : index
      %39 = vector.load %arg7[%c0_23, %c0_24] : memref<128x128xf32, #tpu.memory_space<vmem>>, vector<128x128xf32>
      %cst_25 = arith.constant dense<0.000000e+00> : vector<8x128xf32>
      %40 = tpu.matmul %38, %39, %cst_25 {dimension_numbers = #tpu.dot_dimension_numbers<[1], [0], [0], [1], [0, 0, 1, 1], [], []>} : vector<8x128xf32>, vector<128x128xf32>, vector<8x128xf32> -> vector<8x128xf32>
      %c0_26 = arith.constant 0 : index
      %c0_27 = arith.constant 0 : index
      %41 = vector.load %arg8[%c0_26, %c0_27] : memref<1x128xf32, #tpu.memory_space<vmem>>, vector<1x128xf32>
      %42 = vector.broadcast %41 : vector<1x128xf32> to vector<8x128xf32>
      %43 = arith.addf %40, %42 : vector<8x128xf32>
      %cst_28 = arith.constant 0.000000e+00 : f32
      %44 = vector.broadcast %cst_28 : f32 to vector<8x128xf32>
      %45 = arith.maximumf %43, %44 : vector<8x128xf32>
      %c0_29 = arith.constant 0 : index
      %c0_30 = arith.constant 0 : index
      %46 = vector.load %arg9[%c0_29, %c0_30] : memref<128x128xf32, #tpu.memory_space<vmem>>, vector<128x128xf32>
      %cst_31 = arith.constant dense<0.000000e+00> : vector<8x128xf32>
      %47 = tpu.matmul %45, %46, %cst_31 {dimension_numbers = #tpu.dot_dimension_numbers<[1], [0], [0], [1], [0, 0, 1, 1], [], []>} : vector<8x128xf32>, vector<128x128xf32>, vector<8x128xf32> -> vector<8x128xf32>
      %c0_32 = arith.constant 0 : index
      %c0_33 = arith.constant 0 : index
      %48 = vector.load %arg10[%c0_32, %c0_33] : memref<1x128xf32, #tpu.memory_space<vmem>>, vector<1x128xf32>
      %49 = vector.broadcast %48 : vector<1x128xf32> to vector<8x128xf32>
      %50 = arith.addf %47, %49 : vector<8x128xf32>
      %51 = tpu.iota {dimensions = array<i32: 1>} : vector<8x128xi32>
      %c3_i32_34 = arith.constant 3 : i32
      %52 = vector.broadcast %c3_i32_34 : i32 to vector<8x128xi32>
      %53 = arith.cmpi slt, %51, %52 : vector<8x128xi32>
      %cst_35 = arith.constant -1.000000e+30 : f32
      %54 = vector.broadcast %cst_35 : f32 to vector<8x128xf32>
      %55 = arith.select %53, %50, %54 : vector<8x128xi1>, vector<8x128xf32>
      %cst_36 = arith.constant dense<0xFF800000> : vector<8xf32>
      %56 = vector.multi_reduction <maximumf>, %55, %cst_36 [1] : vector<8x128xf32> to vector<8xf32>
      %57 = vector.shape_cast %56 : vector<8xf32> to vector<8x1xf32>
      %58 = vector.broadcast %57 : vector<8x1xf32> to vector<8x128xf32>
      %59 = arith.subf %55, %58 : vector<8x128xf32>
      %60 = math.exp %59 : vector<8x128xf32>
      %cst_37 = arith.constant dense<0.000000e+00> : vector<8xf32>
      %61 = vector.multi_reduction <add>, %60, %cst_37 [1] : vector<8x128xf32> to vector<8xf32>
      %62 = vector.shape_cast %61 : vector<8xf32> to vector<8x1xf32>
      %63 = math.log %62 : vector<8x1xf32>
      %64 = arith.addf %63, %57 : vector<8x1xf32>
      %65 = vector.broadcast %64 : vector<8x1xf32> to vector<8x128xf32>
      %66 = arith.subf %55, %65 : vector<8x128xf32>
      %c0_38 = arith.constant 0 : index
      %c0_39 = arith.constant 0 : index
      %67 = vector.load %arg11[%c0_38, %c0_39] : memref<8x128xf32, #tpu.memory_space<vmem>>, vector<8x128xf32>
      tpu.vector_store %arg11[%c0_38, %c0_39], %66 {strides = array<i32>} : memref<8x128xf32, #tpu.memory_space<vmem>>, vector<8x128xf32>,
    } else {
    }
    return
  }
  func.func @transform_0(%arg0: i32) -> (i32, i32) {
    %c0_i32 = arith.constant 0 : i32
    %c0_i32_0 = arith.constant 0 : i32
    %c0_i32_1 = arith.constant 0 : i32
    return %c0_i32, %c0_i32_0 : i32, i32
  }
  func.func @transform_1(%arg0: i32) -> (i32, i32) {
    %c0_i32 = arith.constant 0 : i32
    %c0_i32_0 = arith.constant 0 : i32
    %c0_i32_1 = arith.constant 0 : i32
    return %c0_i32, %c0_i32_0 : i32, i32
  }
  func.func @transform_2(%arg0: i32) -> (i32, i32) {
    %c0_i32 = arith.constant 0 : i32
    %c0_i32_0 = arith.constant 0 : i32
    %c0_i32_1 = arith.constant 0 : i32
    return %c0_i32, %c0_i32_0 : i32, i32
  }
  func.func @transform_3(%arg0: i32) -> (i32, i32, i32) {
    %c0_i32 = arith.constant 0 : i32
    %c0_i32_0 = arith.constant 0 : i32
    %c0_i32_1 = arith.constant 0 : i32
    return %arg0, %c0_i32, %c0_i32_0 : i32, i32, i32
  }
  func.func @transform_4(%arg0: i32) -> (i32, i32, i32) {
    %c0_i32 = arith.constant 0 : i32
    %c0_i32_0 = arith.constant 0 : i32
    %c0_i32_1 = arith.constant 0 : i32
    return %arg0, %c0_i32, %c0_i32_0 : i32, i32, i32
  }
  func.func @transform_5(%arg0: i32) -> (i32, i32, i32) {
    %c0_i32 = arith.constant 0 : i32
    %c0_i32_0 = arith.constant 0 : i32
    %c0_i32_1 = arith.constant 0 : i32
    return %arg0, %c0_i32, %c0_i32_0 : i32, i32, i32
  }
  func.func @transform_6(%arg0: i32) -> (i32, i32) {
    %c0_i32 = arith.constant 0 : i32
    %c0_i32_0 = arith.constant 0 : i32
    %c0_i32_1 = arith.constant 0 : i32
    return %c0_i32, %c0_i32_0 : i32, i32
  }
  func.func @transform_7(%arg0: i32) -> (i32, i32) {
    %c0_i32 = arith.constant 0 : i32
    %c0_i32_0 = arith.constant 0 : i32
    %c0_i32_1 = arith.constant 0 : i32
    return %c0_i32, %c0_i32_0 : i32, i32
  }
  func.func @transform_8(%arg0: i32) -> (i32, i32) {
    %c0_i32 = arith.constant 0 : i32
    %c0_i32_0 = arith.constant 0 : i32
    %c0_i32_1 = arith.constant 0 : i32
    return %c0_i32, %c0_i32_0 : i32, i32
  }
  func.func @transform_9(%arg0: i32) -> (i32, i32) {
    %c0_i32 = arith.constant 0 : i32
    %c0_i32_0 = arith.constant 0 : i32
    %c0_i32_1 = arith.constant 0 : i32
    return %c0_i32, %c0_i32_0 : i32, i32
  }
  func.func @transform_10(%arg0: i32) -> (i32, i32) {
    %c0_i32 = arith.constant 0 : i32
    %c0_i32_0 = arith.constant 0 : i32
    %c0_i32_1 = arith.constant 0 : i32
    return %c0_i32, %c0_i32_0 : i32, i32
  }
}

</mosaic_0001>

<bundles_post_ra>
// kernel: gin0_forward.1
= control target key start
LH: loop header
LB: loop body
LE: loop exit
PB: predicated region body
PF: predicated region fallthrough
CT: control target
= control target key end

     0   :  { %s1832_s13 = smov 0   ;;  %s2226_s0 = inlined_call_operand.vmem [shape: bf16[128,128], index: 0, kind: input, shape index: {}]   ;;  %s2227_s1 = inlined_call_operand.vmem [shape: f32[128,128], index: 1, kind: input, shape index: {}]   ;;  %s2228_s2 = inlined_call_operand.vmem [shape: f32[8,128], index: 2, kind: input, shape index: {}]   ;;  %s2229_s3 = inlined_call_operand.vmem [shape: bf16[4,128,128], index: 3, kind: input, shape index: {}]   ;;  %s2230_s4 = inlined_call_operand.vmem [shape: bf16[4,128,128], index: 4, kind: input, shape index: {}]   ;;  %s2231_s5 = inlined_call_operand.vmem [shape: f32[4,4,128], index: 5, kind: input, shape index: {}]   ;;  %s2232_s6 = inlined_call_operand.vmem [shape: f32[128,128], index: 6, kind: input, shape index: {}]   ;;  %s2233_s7 = inlined_call_operand.vmem [shape: f32[1,128], index: 7, kind: input, shape index: {}]   ;;  %s2234_s8 = inlined_call_operand.vmem [shape: f32[128,128], index: 8, kind: input, shape index: {}]   ;;  %s2235_s9 = inlined_call_operand.vmem [shape: f32[1,128], index: 9, kind: input, shape index: {}]   ;;  %s2236_s10 = inlined_call_operand.vmem [shape: f32[8,128], index: 10, kind: output, shape index: {}]  }
   0x1 LB: > { %s1838_s14 = sadd.s32 4294967295, %s1772_s13   ;;  %p1373_p0 = scmp.ge.s32.totalorder %s1772_s13, 1  ;;  %s1772_s13 = sphi %s1832_s13, %s20_s13  }
   0x2   : > { %p326_p1 = scmp.lt.s32.totalorder %s1772_s13, 5 }
   0x4   : > { %p327_p2 = pnand %p1373_p0, %p326_p1 }
   0x5   : > { %p368_p3 = scmp.lt.s32.totalorder (!%p327_p2), %s1838_s14, 3  ;;  %p1379_p4 = scmp.ne.s32.totalorder (!%p327_p2), %s1838_s14, 0 }
   0x6   : > { %330 = sbr.rel (%p327_p2) target bundleno = 1642 (0x66a), region = 60 }
   0xb   : > { %s369_s15 = scalar_select %p368_p3, %s1838_s14, 3 }
   0xc   : > { %386 = sbr.rel (%p1379_p4) target bundleno = 27 (0x1b), region = 64 }
   0xd   : > { %s1409_s16 = sshll.u32 %s369_s15, 6  ;;  %s1378_s17 = sshll.u32 %s369_s15, 2 }
   0xe   : > { %s1847_s20 = scalar_lea.vmem %s2229_s3, %s1409_s16  ;;  %s1852_s23 = scalar_lea.vmem %s2230_s4, %s1409_s16 }
   0xf   : > { %s1857_s26 = scalar_lea.vmem %s2231_s5, %s1378_s17 }
  0x11   : > { %v387_v0 = vld [vmem:[%s2227_s1] sm:$0xff]  ;;  %v388_v1 = vld [vmem:[%s2227_s1 + $0x8] sm:$0xff]  ;;  %v389_v2 = vld [vmem:[%s2227_s1 + $0x10] sm:$0xff]  ;;  %v1774_v6 = vmov 0.0  }
  0x12   : > { %403 = vst [vmem:[#allocation2 + $0x30] sm:$0xff] %v387_v0  ;;  %404 = vst [vmem:[#allocation2] sm:$0xff] %v388_v1  ;;  %v390_v3 = vld [vmem:[%s2227_s1 + $0x18] sm:$0xff]  ;;  %v391_v4 = vld [vmem:[%s2227_s1 + $0x20] sm:$0xff] }
  0x13   : > { %405 = vst [vmem:[#allocation2 + $0x58] sm:$0xff] %v389_v2  ;;  %v392_v5 = vld [vmem:[%s2227_s1 + $0x28] sm:$0xff]  ;;  %419 = vst [vmem:[%s2236_s10] sm:$0xff] %v1774_v6  ;;  %v393_v7 = vld [vmem:[%s2227_s1 + $0x30] sm:$0xff] }
  0x14   : > { %406 = vst [vmem:[#allocation2 + $0x18] sm:$0xff] %v390_v3  ;;  %407 = vst [vmem:[#allocation2 + $0x50] sm:$0xff] %v391_v4  ;;  %v394_v8 = vld [vmem:[%s2227_s1 + $0x38] sm:$0xff]  ;;  %v395_v9 = vld [vmem:[%s2227_s1 + $0x40] sm:$0xff] }
  0x15   : > { %408 = vst [vmem:[#allocation2 + $0x68] sm:$0xff] %v392_v5  ;;  %409 = vst [vmem:[#allocation2 + $0x8] sm:$0xff] %v393_v7  ;;  %v396_v10 = vld [vmem:[%s2227_s1 + $0x48] sm:$0xff]  ;;  %v397_v11 = vld [vmem:[%s2227_s1 + $0x50] sm:$0xff] }
  0x16   : > { %410 = vst [vmem:[#allocation2 + $0x48] sm:$0xff] %v394_v8  ;;  %411 = vst [vmem:[#allocation2 + $0x40] sm:$0xff] %v395_v9  ;;  %v398_v12 = vld [vmem:[%s2227_s1 + $0x58] sm:$0xff]  ;;  %v399_v13 = vld [vmem:[%s2227_s1 + $0x60] sm:$0xff] }
  0x17   : > { %412 = vst [vmem:[#allocation2 + $0x20] sm:$0xff] %v396_v10  ;;  %413 = vst [vmem:[#allocation2 + $0x10] sm:$0xff] %v397_v11  ;;  %v400_v14 = vld [vmem:[%s2227_s1 + $0x68] sm:$0xff]  ;;  %v401_v15 = vld [vmem:[%s2227_s1 + $0x70] sm:$0xff] }
  0x18   : > { %414 = vst [vmem:[#allocation2 + $0x38] sm:$0xff] %v398_v12  ;;  %415 = vst [vmem:[#allocation2 + $0x60] sm:$0xff] %v399_v13  ;;  %v402_v16 = vld [vmem:[%s2227_s1 + $0x78] sm:$0xff] }
  0x19   : > { %416 = vst [vmem:[#allocation2 + $0x70] sm:$0xff] %v400_v14  ;;  %417 = vst [vmem:[#allocation2 + $0x78] sm:$0xff] %v401_v15 }
  0x1a   : > { %418 = vst [vmem:[#allocation2 + $0x28] sm:$0xff] %v402_v16 }
  0x1b PF: > { %v1738_v28 = vld [vmem:[%s2226_s0] sm:$0xff]   ;;  %v424_v32 = vld [vmem:[#allocation2 + $0x50] sm:$0xff]  ;;  %v1746_v35 = vld [vmem:[%s1847_s20 + $0x38] sm:$0xff]   ;;  %p1404_p5 = scmp.ne.s32.totalorder %s1838_s14, 3 }
  0x1c   : > { %1526 = vmatprep.mubr.bf16.mxu0 %v1738_v28  ;;  %v426_v30 = vld [vmem:[#allocation2 + $0x8] sm:$0xff]  ;;  %v1747_v36 = vld [vmem:[%s1847_s20 + $0x30] sm:$0xff]   ;;  %v422_v37 = vld [vmem:[#allocation2 + $0x58] sm:$0xff]  ;;  %1542 = vmatprep.subr.bf16.mxu1 %v1746_v35 }
  0x1d   : > { %v428_v25 = vld [vmem:[#allocation2 + $0x40] sm:$0xff]  ;;  %v427_v31 = vld [vmem:[#allocation2 + $0x48] sm:$0xff]  ;;  %v423_v39 = vld [vmem:[#allocation2 + $0x18] sm:$0xff]  ;;  %1543 = vmatpush3.bf16.msra.mxu1 %v1746_v35 }
  0x1e   : > { %v430_v23 = vld [vmem:[#allocation2 + $0x10] sm:$0xff]  ;;  %v429_v27 = vld [vmem:[#allocation2 + $0x20] sm:$0xff]  ;;  %v455_v33 = vpack.c.bf16 %v427_v31, %v426_v30  ;;  %v425_v34 = vld [vmem:[#allocation2 + $0x68] sm:$0xff]  ;;  %1544 = vmatprep.subr.bf16.mxu1 %v1747_v36  ;;  %v453_v44 = vpack.c.bf16 %v423_v39, %v422_v37 }
  0x1f   : > { %v432_v19 = vld [vmem:[#allocation2 + $0x60] sm:$0xff]  ;;  %v431_v24 = vld [vmem:[#allocation2 + $0x38] sm:$0xff]  ;;  %v456_v29 = vpack.c.bf16 %v429_v27, %v428_v25  ;;  %v454_v38 = vpack.c.bf16 %v425_v34, %v424_v32  ;;  %v1748_v40 = vld [vmem:[%s1847_s20 + $0x28] sm:$0xff]   ;;  %v630_v25 = vlaneseq }
  0x20   : > { %v434_v17 = vld [vmem:[#allocation2 + $0x78] sm:$0xff]  ;;  %v433_v21 = vld [vmem:[#allocation2 + $0x70] sm:$0xff]  ;;  %v457_v26 = vpack.c.bf16 %v431_v24, %v430_v23  ;;  %v421_v42 = vld [vmem:[#allocation2] sm:$0xff] }
  0x21   : > { %v435_v18 = vld [vmem:[#allocation2 + $0x28] sm:$0xff]  ;;  %v458_v22 = vpack.c.bf16 %v433_v21, %v432_v19  ;;  %v420_v41 = vld [vmem:[#allocation2 + $0x30] sm:$0xff]  ;;  %v1749_v43 = vld [vmem:[%s1847_s20 + $0x20] sm:$0xff]   ;;  %1545 = vmatpush3.bf16.msra.mxu1 %v1747_v36 }
  0x22   : > { %v459_v20 = vpack.c.bf16 %v435_v18, %v434_v17  ;;  %1546 = vmatprep.subr.bf16.mxu1 %v1748_v40  ;;  %v452_v45 = vpack.c.bf16 %v421_v42, %v420_v41  ;;  %v1750_v46 = vld [vmem:[%s1847_s20 + $0x18] sm:$0xff]   ;;  %v1751_v47 = vld [vmem:[%s1847_s20 + $0x10] sm:$0xff]   ;;  %v1739_v48 = vld [vmem:[%s2226_s0 + $0x8] sm:$0xff]  }
  0x23   : > { %v1740_v49 = vld [vmem:[%s2226_s0 + $0x10] sm:$0xff]   ;;  %v1741_v50 = vld [vmem:[%s2226_s0 + $0x18] sm:$0xff]   ;;  %v1742_v51 = vld [vmem:[%s2226_s0 + $0x20] sm:$0xff]  }
  0x24   : > { %1510 = vmatprep.subr.bf16.mxu0 %v459_v20  ;;  %v1743_v52 = vld [vmem:[%s2226_s0 + $0x28] sm:$0xff]   ;;  %v1744_v53 = vld [vmem:[%s2226_s0 + $0x30] sm:$0xff]   ;;  %v1745_v54 = vld [vmem:[%s2226_s0 + $0x38] sm:$0xff]  }
  0x25   : > { %1511 = vmatpush3.bf16.msra.mxu0 %v459_v20  ;;  %1547 = vmatpush3.bf16.msra.mxu1 %v1748_v40  ;;  %v1752_v55 = vld [vmem:[%s1847_s20 + $0x8] sm:$0xff]   ;;  %v1753_v56 = vld [vmem:[%s1847_s20] sm:$0xff]   ;;  %v1754_v57 = vld [vmem:[%s1852_s23 + $0x38] sm:$0xff]  }
  0x26   : > { %1512 = vmatprep.subr.bf16.mxu0 %v458_v22  ;;  %1548 = vmatprep.subr.bf16.mxu1 %v1749_v43  ;;  %v1755_v58 = vld [vmem:[%s1852_s23 + $0x30] sm:$0xff]   ;;  %v1756_v59 = vld [vmem:[%s1852_s23 + $0x28] sm:$0xff]   ;;  %v1757_v60 = vld [vmem:[%s1852_s23 + $0x20] sm:$0xff]  }
  0x27   : > { %v1758_v61 = vld [vmem:[%s1852_s23 + $0x18] sm:$0xff]   ;;  %v1760_v23 = vld [vmem:[%s1852_s23 + $0x8] sm:$0xff]   ;;  %v1761_v24 = vld [vmem:[%s1852_s23] sm:$0xff]  }
  0x28   : > { %v1956_v28 = vld [vmem:[%s1857_s26] sm:$0xf] }
  0x29   : > { %1513 = vmatpush3.bf16.msra.mxu0 %v458_v22  ;;  %1549 = vmatpush3.bf16.msra.mxu1 %v1749_v43  ;;  %v1759_v22 = vld [vmem:[%s1852_s23 + $0x10] sm:$0xff]  }
  0x2a   : > { %1514 = vmatprep.subr.bf16.mxu0 %v457_v26  ;;  %1550 = vmatprep.subr.bf16.mxu1 %v1750_v46 }
  0x2d   : > { %1515 = vmatpush3.bf16.msra.mxu0 %v457_v26  ;;  %1551 = vmatpush3.bf16.msra.mxu1 %v1750_v46  ;;  %v1952_v26 = vshrl.u32 %v630_v25, 7 }
  0x2e   : > { %1516 = vmatprep.subr.bf16.mxu0 %v456_v29  ;;  %1552 = vmatprep.subr.bf16.mxu1 %v1751_v47 }
  0x2f   : > { %v632_v27 = vsub.s32 0, %v1952_v26 }
  0x31   : > { %1517 = vmatpush3.bf16.msra.mxu0 %v456_v29  ;;  %1553 = vmatpush3.bf16.msra.mxu1 %v1751_v47  ;;  %v633_v30 = vrot.slane %v1956_v28, %v632_v27  ;;  %v1006_v27 = vsub.s32 3, %v1952_v26 }
  0x32   : > { %1518 = vmatprep.subr.bf16.mxu0 %v455_v33  ;;  %1554 = vmatprep.subr.bf16.mxu1 %v1752_v55 }
  0x35   : > { %1519 = vmatpush3.bf16.msra.mxu0 %v455_v33  ;;  %1555 = vmatpush3.bf16.msra.mxu1 %v1752_v55 }
  0x36   : > { %1520 = vmatprep.subr.bf16.mxu0 %v454_v38  ;;  %1556 = vmatprep.subr.bf16.mxu1 %v1753_v56 }
  0x39   : > { %1521 = vmatpush3.bf16.msra.mxu0 %v454_v38  ;;  %1557 = vmatpush3.bf16.msra.mxu1 %v1753_v56 }
  0x3a   : > { %1522 = vmatprep.subr.bf16.mxu0 %v453_v44  ;;  %1711 = vmatprep.subr.bf16.mxu1 %v1754_v57 }
  0x3d   : > { %1523 = vmatpush3.bf16.msra.mxu0 %v453_v44 }
  0x3e   : > { %1524 = vmatprep.subr.bf16.mxu0 %v452_v45 }
  0x41   : > { %1525 = vmatpush3.bf16.msra.mxu0 %v452_v45 }
  0x42   : > { %1574 = vmatprep.subr.bf16.mxu0 %v1754_v57 }
  0x44   : > { %1527 = vmatmul.mubr.bf16.vlgmr.msra.gmra.mxu0 %v1739_v48 }
  0x45   : > { %1530 = vmatprep.mubr.bf16.mxu0 %v1740_v49  ;;  %1575 = vmatpush3.bf16.msra.mxu0 %v1754_v57 }
  0x46   : > { %1576 = vmatprep.subr.bf16.mxu0 %v1755_v58 }
  0x49   : > { %1577 = vmatpush3.bf16.msra.mxu0 %v1755_v58 }
  0x4a   : > { %1578 = vmatprep.subr.bf16.mxu0 %v1756_v59 }
  0x4c   : > { %1531 = vmatmul.mubr.bf16.gmra.mxu0 %v1741_v50 }
  0x4d   : > { %1534 = vmatprep.mubr.bf16.mxu0 %v1742_v51  ;;  %1579 = vmatpush3.bf16.msra.mxu0 %v1756_v59 }
  0x4e   : > { %1580 = vmatprep.subr.bf16.mxu0 %v1757_v60 }
  0x51   : > { %1581 = vmatpush3.bf16.msra.mxu0 %v1757_v60 }
  0x52   : > { %1582 = vmatprep.subr.bf16.mxu0 %v1758_v61 }
  0x54   : > { %1535 = vmatmul.mubr.bf16.gmra.mxu0 %v1743_v52 }
  0x55   : > { %1538 = vmatprep.mubr.bf16.mxu0 %v1744_v53  ;;  %1583 = vmatpush3.bf16.msra.mxu0 %v1758_v61 }
  0x56   : > { %1584 = vmatprep.subr.bf16.mxu0 %v1759_v22 }
  0x59   : > { %1585 = vmatpush3.bf16.msra.mxu0 %v1759_v22 }
  0x5a   : > { %1586 = vmatprep.subr.bf16.mxu0 %v1760_v23 }
  0x5c   : > { %1539 = vmatmul.mubr.bf16.gmra.mxu0 %v1745_v54 }
  0x5d   : > { %1587 = vmatpush3.bf16.msra.mxu0 %v1760_v23 }
  0x5e   : > { %1588 = vmatprep.subr.bf16.mxu0 %v1761_v24 }
  0x61   : > { %1589 = vmatpush3.bf16.msra.mxu0 %v1761_v24 }
 0x104   : > { %v1528_v62 = vpop.f32.mrf.mxu0 }
 0x106   : > { %v542_v63 = vpop.f32.mrf.mxu0 }
 0x108   : > { %v1529_v0 = vpop.f32.mrf.mxu0 }
 0x109   : > { %v607_v3 = vpack.c.bf16 %v1529_v0, %v1528_v62 }
 0x10a   : > { %v545_v1 = vpop.f32.mrf.mxu0 }
 0x10b   : > { %v606_v2 = vpack.c.bf16 %v545_v1, %v542_v63 }
 0x10c   : > { %v1532_v4 = vpop.f32.mrf.mxu0 }
 0x10d   : > { %1558 = vmatprep.mubr.bf16.mxu1 %v606_v2 }
 0x10e   : > { %v558_v5 = vpop.f32.mrf.mxu0  ;;  %1559 = vmatmul.mubr.bf16.vlgmr.msra.gmra.mxu1 %v607_v3 }
 0x10f   : > { %1719 = vmatpush3.bf16.msra.mxu1 %v1754_v57 }
 0x110   : > { %v1533_v6 = vpop.f32.mrf.mxu0  ;;  %1712 = vmatprep.subr.bf16.mxu1 %v1755_v58 }
 0x111   : > { %v609_v9 = vpack.c.bf16 %v1533_v6, %v1532_v4 }
 0x112   : > { %v561_v7 = vpop.f32.mrf.mxu0 }
 0x113   : > { %v608_v8 = vpack.c.bf16 %v561_v7, %v558_v5  ;;  %1720 = vmatpush3.bf16.msra.mxu1 %v1755_v58 }
 0x114   : > { %v1536_v10 = vpop.f32.mrf.mxu0  ;;  %1713 = vmatprep.subr.bf16.mxu1 %v1756_v59 }
 0x115   : > { %1562 = vmatprep.mubr.bf16.mxu1 %v608_v8 }
 0x116   : > { %v574_v11 = vpop.f32.mrf.mxu0  ;;  %1563 = vmatmul.mubr.bf16.gmra.mxu1 %v609_v9 }
 0x117   : > { %1721 = vmatpush3.bf16.msra.mxu1 %v1756_v59 }
 0x118   : > { %v1537_v12 = vpop.f32.mrf.mxu0  ;;  %1714 = vmatprep.subr.bf16.mxu1 %v1757_v60 }
 0x119   : > { %v611_v15 = vpack.c.bf16 %v1537_v12, %v1536_v10 }
 0x11a   : > { %v577_v13 = vpop.f32.mrf.mxu0 }
 0x11b   : > { %v610_v14 = vpack.c.bf16 %v577_v13, %v574_v11  ;;  %1722 = vmatpush3.bf16.msra.mxu1 %v1757_v60 }
 0x11c   : > { %v1540_v16 = vpop.f32.mrf.mxu0  ;;  %1715 = vmatprep.subr.bf16.mxu1 %v1758_v61 }
 0x11d   : > { %1566 = vmatprep.mubr.bf16.mxu1 %v610_v14 }
 0x11e   : > { %v590_v17 = vpop.f32.mrf.mxu0  ;;  %1567 = vmatmul.mubr.bf16.gmra.mxu1 %v611_v15 }
 0x11f   : > { %1723 = vmatpush3.bf16.msra.mxu1 %v1758_v61 }
 0x120   : > { %v1541_v18 = vpop.f32.mrf.mxu0  ;;  %1716 = vmatprep.subr.bf16.mxu1 %v1759_v22 }
 0x121   : > { %v613_v21 = vpack.c.bf16 %v1541_v18, %v1540_v16 }
 0x122   : > { %v593_v19 = vpop.f32.mrf.mxu0 }
 0x123   : > { %v612_v20 = vpack.c.bf16 %v593_v19, %v590_v17  ;;  %1724 = vmatpush3.bf16.msra.mxu1 %v1759_v22  ;;  %v821_v22 = vsub.s32 1, %v1952_v26 }
 0x124   : > { %1717 = vmatprep.subr.bf16.mxu1 %v1760_v23 }
 0x125   : > { %1570 = vmatprep.mubr.bf16.mxu1 %v612_v20 }
 0x126   : > { %1571 = vmatmul.mubr.bf16.gmra.mxu1 %v613_v21 }
 0x127   : > { %1725 = vmatpush3.bf16.msra.mxu1 %v1760_v23  ;;  %v1961_v23 = vrot.slane %v1956_v28, %v821_v22 }
 0x128   : > { %1718 = vmatprep.subr.bf16.mxu1 %v1761_v24 }
 0x12b   : > { %1726 = vmatpush3.bf16.msra.mxu1 %v1761_v24  ;;  %v986_v24 = vsub.s32 2, %v1952_v26 }
 0x1ce   : > { %v1560_v29 = vpop.f32.mrf.mxu1 }
 0x1cf   : > { %v725_v35 = vadd.f32 %v1560_v29, %v633_v30 }
 0x1d0   : > { %v716_v31 = vpop.f32.mrf.mxu1 }
 0x1d1   : > { %v717_v33 = vadd.f32 %v716_v31, %v633_v30  ;;  %v781_v42 = vmax.f32 %v725_v35, 0.0  ;;  %v1967_v31 = vrot.slane %v1956_v28, %v986_v24 }
 0x1d2   : > { %v1561_v32 = vpop.f32.mrf.mxu1 }
 0x1d3   : > { %v728_v34 = vadd.f32 %v1561_v32, %v633_v30  ;;  %v779_v40 = vmax.f32 %v717_v33, 0.0 }
 0x1d4   : > { %v719_v36 = vpop.f32.mrf.mxu1 }
 0x1d5   : > { %v720_v37 = vadd.f32 %v719_v36, %v633_v30  ;;  %v782_v38 = vmax.f32 %v728_v34, 0.0  ;;  %v1970_v34 = vrot.slane %v1956_v28, %v1006_v27 }
 0x1d6   : > { %v1564_v39 = vpop.f32.mrf.mxu1 }
 0x1d7   : > { %v780_v41 = vmax.f32 %v720_v37, 0.0  ;;  %v796_v45 = vpack.c.bf16 %v782_v38, %v781_v42  ;;  %v741_v49 = vadd.f32 %v1564_v39, %v633_v30 }
 0x1d8   : > { %v732_v43 = vpop.f32.mrf.mxu1 }
 0x1d9   : > { %v795_v44 = vpack.c.bf16 %v780_v41, %v779_v40  ;;  %v733_v47 = vadd.f32 %v732_v43, %v633_v30  ;;  %v785_v56 = vmax.f32 %v741_v49, 0.0 }
 0x1da   : > { %v1565_v46 = vpop.f32.mrf.mxu1 }
 0x1db   : > { %v744_v48 = vadd.f32 %v1565_v46, %v633_v30  ;;  %1590 = vmatprep.mubr.bf16.mxu0 %v795_v44  ;;  %v783_v54 = vmax.f32 %v733_v47, 0.0 }
 0x1dc   : > { %v735_v50 = vpop.f32.mrf.mxu1  ;;  %1591 = vmatmul.mubr.bf16.vlgmr.msra.gmra.mxu0 %v796_v45 }
 0x1dd   : > { %v736_v51 = vadd.f32 %v735_v50, %v633_v30  ;;  %v786_v52 = vmax.f32 %v744_v48, 0.0 }
 0x1de   : > { %v1568_v53 = vpop.f32.mrf.mxu1 }
 0x1df   : > { %v784_v55 = vmax.f32 %v736_v51, 0.0  ;;  %v798_v59 = vpack.c.bf16 %v786_v52, %v785_v56  ;;  %v757_v63 = vadd.f32 %v1568_v53, %v633_v30 }
 0x1e0   : > { %v748_v57 = vpop.f32.mrf.mxu1 }
 0x1e1   : > { %v797_v58 = vpack.c.bf16 %v784_v55, %v783_v54  ;;  %v749_v61 = vadd.f32 %v748_v57, %v633_v30  ;;  %v789_v6 = vmax.f32 %v757_v63, 0.0 }
 0x1e2   : > { %v1569_v60 = vpop.f32.mrf.mxu1 }
 0x1e3   : > { %v760_v62 = vadd.f32 %v1569_v60, %v633_v30  ;;  %1594 = vmatprep.mubr.bf16.mxu0 %v797_v58  ;;  %v787_v4 = vmax.f32 %v749_v61, 0.0 }
 0x1e4   : > { %v751_v0 = vpop.f32.mrf.mxu1  ;;  %1595 = vmatmul.mubr.bf16.gmra.mxu0 %v798_v59 }
 0x1e5   : > { %v752_v1 = vadd.f32 %v751_v0, %v633_v30  ;;  %v790_v2 = vmax.f32 %v760_v62, 0.0 }
 0x1e6   : > { %v1572_v3 = vpop.f32.mrf.mxu1 }
 0x1e7   : > { %v788_v5 = vmax.f32 %v752_v1, 0.0  ;;  %v800_v9 = vpack.c.bf16 %v790_v2, %v789_v6  ;;  %v773_v13 = vadd.f32 %v1572_v3, %v633_v30 }
 0x1e8   : > { %v764_v7 = vpop.f32.mrf.mxu1 }
 0x1e9   : > { %v799_v8 = vpack.c.bf16 %v788_v5, %v787_v4  ;;  %v765_v11 = vadd.f32 %v764_v7, %v633_v30  ;;  %v793_v19 = vmax.f32 %v773_v13, 0.0 }
 0x1ea   : > { %v1573_v10 = vpop.f32.mrf.mxu1 }
 0x1eb   : > { %v776_v12 = vadd.f32 %v1573_v10, %v633_v30  ;;  %1598 = vmatprep.mubr.bf16.mxu1 %v799_v8  ;;  %v791_v17 = vmax.f32 %v765_v11, 0.0 }
 0x1ec   : > { %v767_v14 = vpop.f32.mrf.mxu1  ;;  %1599 = vmatmul.mubr.bf16.vlgmr.msra.gmra.mxu1 %v800_v9 }
 0x1ed   : > { %v768_v15 = vadd.f32 %v767_v14, %v633_v30  ;;  %v794_v16 = vmax.f32 %v776_v12, 0.0 }
 0x1ef   : > { %v792_v18 = vmax.f32 %v768_v15, 0.0  ;;  %v802_v21 = vpack.c.bf16 %v794_v16, %v793_v19 }
 0x1f1   : > { %v801_v20 = vpack.c.bf16 %v792_v18, %v791_v17 }
 0x1f3   : > { %1602 = vmatprep.mubr.bf16.mxu1 %v801_v20 }
 0x1f4   : > { %1603 = vmatmul.mubr.bf16.gmra.mxu1 %v802_v21 }
 0x29c   : > { %v1592_v29 = vpop.f32.mrf.mxu0 }
 0x29d   : > { %v914_v30 = vadd.f32 %v1592_v29, %v1961_v23 }
 0x29e   : > { %v905_v32 = vpop.f32.mrf.mxu0 }
 0x29f   : > { %v970_v33 = vmax.f32 %v914_v30, 0.0  ;;  %v906_v35 = vadd.f32 %v905_v32, %v1961_v23 }
 0x2a0   : > { %v1593_v36 = vpop.f32.mrf.mxu0 }
 0x2a1   : > { %v990_v37 = vmul.f32 %v1967_v31, %v970_v33  ;;  %v968_v38 = vmax.f32 %v906_v35, 0.0  ;;  %v917_v39 = vadd.f32 %v1593_v36, %v1961_v23 }
 0x2a2   : > { %v908_v26 = vpop.f32.mrf.mxu0 }
 0x2a3   : > { %v1976_v40 = vadd.f32 %v1970_v34, %v990_v37  ;;  %v988_v41 = vmul.f32 %v1967_v31, %v968_v38  ;;  %v971_v42 = vmax.f32 %v917_v39, 0.0  ;;  %v909_v43 = vadd.f32 %v908_v26, %v1961_v23 }
 0x2a4   : > { %v1596_v44 = vpop.f32.mrf.mxu0 }
 0x2a5   : > { %1026 = vst [vmem:[#allocation2 + $0x58] sm:$0xff] %v1976_v40  ;;  %v1982_v28 = vadd.f32 %v1970_v34, %v988_v41  ;;  %v991_v45 = vmul.f32 %v1967_v31, %v971_v42  ;;  %v969_v46 = vmax.f32 %v909_v43, 0.0  ;;  %v930_v47 = vadd.f32 %v1596_v44, %v1961_v23 }
 0x2a6   : > { %v921_v48 = vpop.f32.mrf.mxu0 }
 0x2a7   : > { %1024 = vst [vmem:[#allocation2 + $0x30] sm:$0xff] %v1982_v28  ;;  %v1988_v49 = vadd.f32 %v1970_v34, %v991_v45  ;;  %v989_v50 = vmul.f32 %v1967_v31, %v969_v46  ;;  %v974_v51 = vmax.f32 %v930_v47, 0.0  ;;  %v922_v52 = vadd.f32 %v921_v48, %v1961_v23 }
 0x2a8   : > { %v1597_v53 = vpop.f32.mrf.mxu0 }
 0x2a9   : > { %1027 = vst [vmem:[#allocation2 + $0x18] sm:$0xff] %v1988_v49  ;;  %v1994_v54 = vadd.f32 %v1970_v34, %v989_v50  ;;  %v994_v55 = vmul.f32 %v1967_v31, %v974_v51  ;;  %v972_v56 = vmax.f32 %v922_v52, 0.0  ;;  %v933_v57 = vadd.f32 %v1597_v53, %v1961_v23 }
 0x2aa   : > { %v924_v58 = vpop.f32.mrf.mxu0 }
 0x2ab   : > { %1025 = vst [vmem:[#allocation2] sm:$0xff] %v1994_v54  ;;  %v2000_v59 = vadd.f32 %v1970_v34, %v994_v55  ;;  %v992_v60 = vmul.f32 %v1967_v31, %v972_v56  ;;  %v975_v61 = vmax.f32 %v933_v57, 0.0  ;;  %v925_v62 = vadd.f32 %v924_v58, %v1961_v23 }
 0x2ac   : > { %v1600_v63 = vpop.f32.mrf.mxu1 }
 0x2ad   : > { %1030 = vst [vmem:[#allocation2 + $0x8] sm:$0xff] %v2000_v59  ;;  %v2006_v0 = vadd.f32 %v1970_v34, %v992_v60  ;;  %v995_v1 = vmul.f32 %v1967_v31, %v975_v61  ;;  %v973_v2 = vmax.f32 %v925_v62, 0.0  ;;  %v946_v3 = vadd.f32 %v1600_v63, %v1961_v23 }
 0x2ae   : > { %v937_v4 = vpop.f32.mrf.mxu1 }
 0x2af   : > { %1028 = vst [vmem:[#allocation2 + $0x50] sm:$0xff] %v2006_v0  ;;  %v2012_v5 = vadd.f32 %v1970_v34, %v995_v1  ;;  %v993_v6 = vmul.f32 %v1967_v31, %v973_v2  ;;  %v978_v7 = vmax.f32 %v946_v3, 0.0  ;;  %v938_v8 = vadd.f32 %v937_v4, %v1961_v23 }
 0x2b0   : > { %v1601_v9 = vpop.f32.mrf.mxu1 }
 0x2b1   : > { %1031 = vst [vmem:[#allocation2 + $0x48] sm:$0xff] %v2012_v5  ;;  %v2018_v10 = vadd.f32 %v1970_v34, %v993_v6  ;;  %v998_v11 = vmul.f32 %v1967_v31, %v978_v7  ;;  %v976_v12 = vmax.f32 %v938_v8, 0.0  ;;  %v949_v13 = vadd.f32 %v1601_v9, %v1961_v23 }
 0x2b2   : > { %v940_v14 = vpop.f32.mrf.mxu1 }
 0x2b3   : > { %1029 = vst [vmem:[#allocation2 + $0x68] sm:$0xff] %v2018_v10  ;;  %v2024_v15 = vadd.f32 %v1970_v34, %v998_v11  ;;  %v996_v16 = vmul.f32 %v1967_v31, %v976_v12  ;;  %v979_v17 = vmax.f32 %v949_v13, 0.0  ;;  %v941_v18 = vadd.f32 %v940_v14, %v1961_v23 }
 0x2b4   : > { %v1604_v19 = vpop.f32.mrf.mxu1 }
 0x2b5   : > { %1034 = vst [vmem:[#allocation2 + $0x10] sm:$0xff] %v2024_v15  ;;  %v2030_v20 = vadd.f32 %v1970_v34, %v996_v16  ;;  %v999_v21 = vmul.f32 %v1967_v31, %v979_v17  ;;  %v977_v22 = vmax.f32 %v941_v18, 0.0  ;;  %v962_v24 = vadd.f32 %v1604_v19, %v1961_v23 }
 0x2b6   : > { %v953_v27 = vpop.f32.mrf.mxu1 }
 0x2b7   : > { %1032 = vst [vmem:[#allocation2 + $0x40] sm:$0xff] %v2030_v20  ;;  %v1019_v29 = vadd.f32 %v1970_v34, %v999_v21  ;;  %v997_v30 = vmul.f32 %v1967_v31, %v977_v22  ;;  %v982_v32 = vmax.f32 %v962_v24, 0.0  ;;  %v954_v33 = vadd.f32 %v953_v27, %v1961_v23 }
 0x2b8   : > { %v1605_v35 = vpop.f32.mrf.mxu1 }
 0x2b9   : > { %1035 = vst [vmem:[#allocation2 + $0x38] sm:$0xff] %v1019_v29  ;;  %v1017_v36 = vadd.f32 %v1970_v34, %v997_v30  ;;  %v1002_v37 = vmul.f32 %v1967_v31, %v982_v32  ;;  %v980_v38 = vmax.f32 %v954_v33, 0.0  ;;  %v965_v39 = vadd.f32 %v1605_v35, %v1961_v23 }
 0x2ba   : > { %v956_v26 = vpop.f32.mrf.mxu1 }
 0x2bb   : > { %1033 = vst [vmem:[#allocation2 + $0x20] sm:$0xff] %v1017_v36  ;;  %v1022_v41 = vadd.f32 %v1970_v34, %v1002_v37  ;;  %v1000_v42 = vmul.f32 %v1967_v31, %v980_v38  ;;  %v983_v43 = vmax.f32 %v965_v39, 0.0  ;;  %v957_v44 = vadd.f32 %v956_v26, %v1961_v23 }
 0x2bd   : > { %1038 = vst [vmem:[#allocation2 + $0x78] sm:$0xff] %v1022_v41  ;;  %v1020_v45 = vadd.f32 %v1970_v34, %v1000_v42  ;;  %v1003_v46 = vmul.f32 %v1967_v31, %v983_v43  ;;  %v981_v47 = vmax.f32 %v957_v44, 0.0 }
 0x2bf   : > { %1036 = vst [vmem:[#allocation2 + $0x60] sm:$0xff] %v1020_v45  ;;  %v1023_v48 = vadd.f32 %v1970_v34, %v1003_v46  ;;  %v1001_v50 = vmul.f32 %v1967_v31, %v981_v47  ;;  %1043 = sbr.rel (%p1404_p5) target bundleno = 1642 (0x66a), region = 68 }
 0x2c1   : > { %1039 = vst [vmem:[#allocation2 + $0x28] sm:$0xff] %v1023_v48  ;;  %v1021_v51 = vadd.f32 %v1970_v34, %v1001_v50 }
 0x2c3   : > { %1037 = vst [vmem:[#allocation2 + $0x70] sm:$0xff] %v1021_v51 }
 0x2c4   : > { %v1130_v23 = vld [vmem:[%s2232_s6 + $0x78] sm:$0xff]  ;;  %v1775_v52 = vmov 0.0   ;;  %vm1776_vm0 = vmmov 0   ;;  %v1129_v31 = vld [vmem:[%s2232_s6 + $0x70] sm:$0xff]  ;;  %v1128_v34 = vld [vmem:[%s2232_s6 + $0x68] sm:$0xff]  ;;  %v1303_v24 = vand.u32 127, %v630_v25 }
 0x2c5   : > { %1606 = vmatprep.subr.mxu0 %v1775_v52  ;;  %1638 = vmatprep.mubr.msk.f32.mxu0 %vm1776_vm0, %v1775_v52  ;;  %v1127_v53 = vld [vmem:[%s2232_s6 + $0x60] sm:$0xff]  ;;  %v1126_v55 = vld [vmem:[%s2232_s6 + $0x58] sm:$0xff]  ;;  %v1125_v56 = vld [vmem:[%s2232_s6 + $0x50] sm:$0xff] }
 0x2c6   : > { %1607 = vmatpush3.msra.mxu0 %v1023_v48  ;;  %1641 = vmatprep.subr.mxu1 %v1775_v52  ;;  %v1124_v57 = vld [vmem:[%s2232_s6 + $0x48] sm:$0xff]  ;;  %v1123_v58 = vld [vmem:[%s2232_s6 + $0x40] sm:$0xff]  ;;  %v1122_v60 = vld [vmem:[%s2232_s6 + $0x38] sm:$0xff]  ;;  %vm1304_vm1 = vcmp.lt.s32.totalorder %v1303_v24, 3 }
 0x2c7   : > { %1608 = vmatprep.subr.mxu0 %v1775_v52  ;;  %1642 = vmatpush3.msra.mxu1 %v1130_v23  ;;  %v1121_v61 = vld [vmem:[%s2232_s6 + $0x30] sm:$0xff]  ;;  %v1120_v62 = vld [vmem:[%s2232_s6 + $0x28] sm:$0xff]  ;;  %v1119_v63 = vld [vmem:[%s2232_s6 + $0x20] sm:$0xff] }
 0x2c8   : > { %1609 = vmatpush3.msra.mxu0 %v1022_v41  ;;  %1643 = vmatprep.subr.mxu1 %v1775_v52  ;;  %v1117_v1 = vld [vmem:[%s2232_s6 + $0x10] sm:$0xff]  ;;  %v1222_v2 = vld [vmem:[%s2234_s8 + $0x68] sm:$0xff]  ;;  %v1221_v3 = vld [vmem:[%s2234_s8 + $0x60] sm:$0xff] }
 0x2c9   : > { %1610 = vmatprep.subr.mxu0 %v1775_v52  ;;  %1644 = vmatpush3.msra.mxu1 %v1129_v31  ;;  %v1220_v4 = vld [vmem:[%s2234_s8 + $0x58] sm:$0xff]  ;;  %v1218_v6 = vld [vmem:[%s2234_s8 + $0x48] sm:$0xff]  ;;  %v1217_v7 = vld [vmem:[%s2234_s8 + $0x40] sm:$0xff] }
 0x2ca   : > { %1611 = vmatpush3.msra.mxu0 %v1021_v51  ;;  %1645 = vmatprep.subr.mxu1 %v1775_v52  ;;  %v1216_v8 = vld [vmem:[%s2234_s8 + $0x38] sm:$0xff]  ;;  %v1215_v9 = vld [vmem:[%s2234_s8 + $0x30] sm:$0xff]  ;;  %v1213_v11 = vld [vmem:[%s2234_s8 + $0x20] sm:$0xff] }
 0x2cb   : > { %1612 = vmatprep.subr.mxu0 %v1775_v52  ;;  %1646 = vmatpush3.msra.mxu1 %v1128_v34  ;;  %v1212_v12 = vld [vmem:[%s2234_s8 + $0x18] sm:$0xff]  ;;  %v1210_v16 = vld [vmem:[%s2234_s8 + $0x8] sm:$0xff]  ;;  %v1209_v17 = vld [vmem:[%s2234_s8] sm:$0xff] }
 0x2cc   : > { %1613 = vmatpush3.msra.mxu0 %v1020_v45  ;;  %1647 = vmatprep.subr.mxu1 %v1775_v52  ;;  %v1405_v18 = vld [vmem:[%s2233_s7] ss:$0 sm:$0xff] }
 0x2cd   : > { %1614 = vmatprep.subr.mxu0 %v1775_v52  ;;  %1648 = vmatpush3.msra.mxu1 %v1127_v53  ;;  %v1406_v27 = vld [vmem:[%s2235_s9] ss:$0 sm:$0xff] }
 0x2ce   : > { %1615 = vmatpush3.msra.mxu0 %v1019_v29  ;;  %1649 = vmatprep.subr.mxu1 %v1775_v52 }
 0x2cf   : > { %1616 = vmatprep.subr.mxu0 %v1775_v52  ;;  %1650 = vmatpush3.msra.mxu1 %v1126_v55 }
 0x2d0   : > { %1617 = vmatpush3.msra.mxu0 %v2024_v15  ;;  %1651 = vmatprep.subr.mxu1 %v1775_v52  ;;  %v1211_v15 = vld [vmem:[%s2234_s8 + $0x10] sm:$0xff] }
 0x2d1   : > { %1618 = vmatprep.subr.mxu0 %v1775_v52  ;;  %1652 = vmatpush3.msra.mxu1 %v1125_v56 }
 0x2d2   : > { %1619 = vmatpush3.msra.mxu0 %v1017_v36  ;;  %1653 = vmatprep.subr.mxu1 %v1775_v52 }
 0x2d3   : > { %1620 = vmatprep.subr.mxu0 %v1775_v52  ;;  %1654 = vmatpush3.msra.mxu1 %v1124_v57 }
 0x2d4   : > { %1621 = vmatpush3.msra.mxu0 %v2030_v20  ;;  %1655 = vmatprep.subr.mxu1 %v1775_v52 }
 0x2d5   : > { %1622 = vmatprep.subr.mxu0 %v1775_v52  ;;  %1656 = vmatpush3.msra.mxu1 %v1123_v58 }
 0x2d6   : > { %1623 = vmatpush3.msra.mxu0 %v2012_v5  ;;  %1657 = vmatprep.subr.mxu1 %v1775_v52  ;;  %v1219_v5 = vld [vmem:[%s2234_s8 + $0x50] sm:$0xff] }
 0x2d7   : > { %1624 = vmatprep.subr.mxu0 %v1775_v52  ;;  %1658 = vmatpush3.msra.mxu1 %v1122_v60 }
 0x2d8   : > { %1625 = vmatpush3.msra.mxu0 %v2000_v59  ;;  %1659 = vmatprep.subr.mxu1 %v1775_v52  ;;  %v1118_v59 = vld [vmem:[%s2232_s6 + $0x18] sm:$0xff] }
 0x2d9   : > { %1626 = vmatprep.subr.mxu0 %v1775_v52  ;;  %1660 = vmatpush3.msra.mxu1 %v1121_v61 }
 0x2da   : > { %1627 = vmatpush3.msra.mxu0 %v2018_v10  ;;  %1661 = vmatprep.subr.mxu1 %v1775_v52  ;;  %v1214_v10 = vld [vmem:[%s2234_s8 + $0x28] sm:$0xff] }
 0x2db   : > { %1628 = vmatprep.subr.mxu0 %v1775_v52  ;;  %1662 = vmatpush3.msra.mxu1 %v1120_v62 }
 0x2dc   : > { %1629 = vmatpush3.msra.mxu0 %v2006_v0  ;;  %1663 = vmatprep.subr.mxu1 %v1775_v52  ;;  %v1116_v0 = vld [vmem:[%s2232_s6 + $0x8] sm:$0xff] }
 0x2dd   : > { %1630 = vmatprep.subr.mxu0 %v1775_v52  ;;  %1664 = vmatpush3.msra.mxu1 %v1119_v63 }
 0x2de   : > { %1631 = vmatpush3.msra.mxu0 %v1988_v49  ;;  %1665 = vmatprep.subr.mxu1 %v1775_v52  ;;  %v1044_v49 = vld [vmem:[%s2228_s2] sm:$0xff] }
 0x2df   : > { %1632 = vmatprep.subr.mxu0 %v1775_v52  ;;  %1666 = vmatpush3.msra.mxu1 %v1118_v59 }
 0x2e0   : > { %1633 = vmatpush3.msra.mxu0 %v1976_v40  ;;  %1667 = vmatprep.subr.mxu1 %v1775_v52  ;;  %v1115_v40 = vld [vmem:[%s2232_s6] sm:$0xff] }
 0x2e1   : > { %1634 = vmatprep.subr.mxu0 %v1775_v52  ;;  %1668 = vmatpush3.msra.mxu1 %v1117_v1 }
 0x2e2   : > { %1635 = vmatpush3.msra.mxu0 %v1994_v54  ;;  %1669 = vmatprep.subr.mxu1 %v1775_v52  ;;  %v1223_v54 = vld [vmem:[%s2234_s8 + $0x70] sm:$0xff] }
 0x2e3   : > { %1636 = vmatprep.subr.mxu0 %v1775_v52  ;;  %1670 = vmatpush3.msra.mxu1 %v1116_v0 }
 0x2e4   : > { %1637 = vmatpush3.msra.mxu0 %v1982_v28  ;;  %1671 = vmatprep.subr.mxu1 %v1775_v52  ;;  %v1224_v28 = vld [vmem:[%s2234_s8 + $0x78] sm:$0xff] }
 0x2e5   : > { %1639 = vmatmul.mubr.f32.vlgmr.msra.gmra.mxu0 %v1044_v49  ;;  %1673 = vmatprep.mubr.msk.f32.mxu1 %vm1776_vm0, %v1775_v52 }
 0x2e6   : > { %1676 = vmatprep.subr.mxu0 %v1775_v52  ;;  %1708 = vmatprep.mubr.msk.f32.mxu0 %vm1776_vm0, %v1775_v52 }
 0x2e7   : > { %1672 = vmatpush3.msra.mxu1 %v1115_v40  ;;  %1677 = vmatpush3.msra.mxu0 %v1224_v28 }
 0x2e8   : > { %1678 = vmatprep.subr.mxu0 %v1775_v52 }
 0x2e9   : > { %1679 = vmatpush3.msra.mxu0 %v1223_v54 }
 0x2ea   : > { %1680 = vmatprep.subr.mxu0 %v1775_v52 }
 0x2eb   : > { %1681 = vmatpush3.msra.mxu0 %v1222_v2 }
 0x2ec   : > { %1682 = vmatprep.subr.mxu0 %v1775_v52 }
 0x2ed   : > { %1683 = vmatpush3.msra.mxu0 %v1221_v3 }
 0x2ee   : > { %1684 = vmatprep.subr.mxu0 %v1775_v52 }
 0x2ef   : > { %1685 = vmatpush3.msra.mxu0 %v1220_v4 }
 0x2f0   : > { %1686 = vmatprep.subr.mxu0 %v1775_v52 }
 0x2f1   : > { %1687 = vmatpush3.msra.mxu0 %v1219_v5 }
 0x2f2   : > { %1688 = vmatprep.subr.mxu0 %v1775_v52 }
 0x2f3   : > { %1689 = vmatpush3.msra.mxu0 %v1218_v6 }
 0x2f4   : > { %1690 = vmatprep.subr.mxu0 %v1775_v52 }
 0x2f5   : > { %1691 = vmatpush3.msra.mxu0 %v1217_v7 }
 0x2f6   : > { %1692 = vmatprep.subr.mxu0 %v1775_v52 }
 0x2f7   : > { %1693 = vmatpush3.msra.mxu0 %v1216_v8 }
 0x2f8   : > { %1694 = vmatprep.subr.mxu0 %v1775_v52 }
 0x2f9   : > { %1695 = vmatpush3.msra.mxu0 %v1215_v9 }
 0x2fa   : > { %1696 = vmatprep.subr.mxu0 %v1775_v52 }
 0x2fb   : > { %1697 = vmatpush3.msra.mxu0 %v1214_v10 }
 0x2fc   : > { %1698 = vmatprep.subr.mxu0 %v1775_v52 }
 0x2fd   : > { %1699 = vmatpush3.msra.mxu0 %v1213_v11 }
 0x2fe   : > { %1700 = vmatprep.subr.mxu0 %v1775_v52 }
 0x2ff   : > { %1701 = vmatpush3.msra.mxu0 %v1212_v12 }
 0x300   : > { %1702 = vmatprep.subr.mxu0 %v1775_v52 }
 0x301   : > { %1703 = vmatpush3.msra.mxu0 %v1211_v15 }
 0x302   : > { %1704 = vmatprep.subr.mxu0 %v1775_v52 }
 0x303   : > { %1705 = vmatpush3.msra.mxu0 %v1210_v16 }
 0x304   : > { %1706 = vmatprep.subr.mxu0 %v1775_v52 }
 0x305   : > { %1707 = vmatpush3.msra.mxu0 %v1209_v17 }
 0x3a5   : > { %v1111_v13 = vpop.f32.mrf.mxu0 }
 0x3a6   : > { %1674 = vmatmul.mubr.f32.vlgmr.msra.gmra.mxu1 %v1111_v13 }
 0x3a7   : > { %v1640_v14 = vpop.f32.mrf.mxu0 }
 0x466   : > { %v1204_v19 = vpop.f32.mrf.mxu1 }
 0x467   : > { %v1205_v20 = vadd.f32 %v1405_v18, %v1204_v19 }
 0x468   : > { %v1675_v21 = vpop.f32.mrf.mxu1 }
 0x469   : > { %v1208_v22 = vmax.f32 %v1205_v20, 0.0 }
 0x46b   : > { %1709 = vmatmul.mubr.f32.vlgmr.msra.gmra.mxu0 %v1208_v22 }
 0x52b   : > { %v1298_v29 = vpop.f32.mrf.mxu0 }
 0x52c   : > { %v1299_v30 = vadd.f32 %v1406_v27, %v1298_v29 }
 0x52d   : > { %v1710_v32 = vpop.f32.mrf.mxu0 }
 0x52e   : > { %v1305_v33 = vsel %vm1304_vm1, %v1299_v30, -1e+30 }
 0x52f   : > { %1306 = vmax.xlane.f32.xlu0 %v1305_v33 }
 0x5b8   : > { %v1307_v35 = vpop.xlane.xlu0 %1306 }
 0x5b9   : > { %v1308_v36 = vsub.f32 %v1305_v33, %v1307_v35 }
 0x5bb   : > { %v1309_v37 = vmul.f32 1.442695, %v1308_v36 }
 0x5bd   : > { %1762 = vpow2.f32 %v1309_v37 }
 0x5ca   : > { %v1763_v38 = vpop.eup %1762 }
 0x5cb   : > { %1311 = vadd.xlane.f32.xlu0 %v1763_v38 }
 0x654   : > { %v1312_v39 = vpop.xlane.xlu0 %1311 }
 0x655   : > { %1764 = vlog2.f32 %v1312_v39 }
 0x662   : > { %v1765_v26 = vpop.eup %1764 }
 0x663   : > { %v1314_v25 = vmul.f32 0.6931472, %v1765_v26 }
 0x665   : > { %v1315_v41 = vadd.f32 %v1314_v25, %v1307_v35 }
 0x667   : > { %v1316_v42 = vsub.f32 %v1305_v33, %v1315_v41 }
 0x669   : > { %1317 = vst [vmem:[%s2236_s10] sm:$0xff] %v1316_v42 }
 0x66a PF: > { %s20_s13 = sadd.s32 1, %s1772_s13  }
 0x66b   : > { %p17_p6 = scmp.ge.s32.totalorder %s20_s13, 6  }
 0x66d   :  { %19 = sbr.rel (!%p17_p6) target bundleno = 1 (0x1), region = 100 }

</bundles_post_ra>
